<compile_context>
chip_gen: v7x
topology: tpu7x:2x2x1
jax: 0.10.0
libtpu: 0.0.40
codegen_flags: <defaults>
</compile_context>

<pallas_src>
import functools

import jax
import jax.numpy as jnp
from jax.experimental import pallas as pl
from jax.experimental.pallas import tpu as pltpu


def _round_up(x: int, m: int) -> int:
    return ((x + m - 1) // m) * m


def _vmem_capacity_bytes() -> int:
    try:
        cap = int(pltpu.get_tpu_info().vmem_capacity_bytes)
        if cap > 0:
            return cap
    except Exception:
        pass
    return 64 * 1024 * 1024   # conservative fallback (v7x per-TC size)


def _modularity_kernel(a_ref, p_aug_ref, p_strip_ref, out_ref,
                       trk_ref, m2_ref, dtp_ref, *, n_rows):
    """Accumulates one (TM, N) row strip of A for one (level, split) pair."""
    c = pl.program_id(1)
    r = pl.program_id(2)
    n_r = pl.num_programs(2)
    tm = a_ref.shape[0]
    k = p_strip_ref.shape[-1]

    @pl.when(r == 0)
    def _init():
        trk_ref[...] = jnp.zeros_like(trk_ref)
        m2_ref[...] = jnp.zeros_like(m2_ref)
        dtp_ref[...] = jnp.zeros_like(dtp_ref)

    # Row-validity mask for the ragged / possibly out-of-range strip.  OOB rows
    # of the block contain unspecified data; `where` (select) kills them even
    # if they are NaN/Inf.
    start = (c * n_r + r) * tm
    row_ids = jax.lax.broadcasted_iota(jnp.int32, (tm, 1), 0)
    valid = (row_ids + start) < n_rows                         # (tm, 1)

    # Native-dtype strip -> bf16 on the VPU (exact for 0/1 adjacency), then a
    # single-pass bf16 MXU matmul with f32 accumulation.
    a = a_ref[...].astype(jnp.bfloat16)                        # (tm, N)
    p_aug = p_aug_ref[...]                                     # (N, 2k+1) bf16
    ap_aug = jnp.dot(a, p_aug, preferred_element_type=jnp.float32)  # (tm, 2k+1)
    ap_aug = jnp.where(valid, ap_aug, 0.0)

    ap = ap_aug[:, :k] + ap_aug[:, k:2 * k]                    # A @ P, ~f32 accuracy
    d = ap_aug[:, 2 * k:2 * k + 1]                             # (tm, 1) degrees (exact)

    ps = jnp.where(valid, p_strip_ref[...], 0.0)               # (tm, k) f32

    # Sublane-only reductions; the cross-lane reduce is deferred to finalize.
    trk_ref[...] += jnp.sum(ap * ps, axis=0, keepdims=True)    # (1, k)
    m2_ref[...] += jnp.sum(d, axis=0, keepdims=True)           # (1, 1)
    dtp_ref[...] += jnp.sum(d * ps, axis=0, keepdims=True)     # (1, k)

    @pl.when(r == n_r - 1)
    def _finalize():
        out_ref[...] = jnp.zeros_like(out_ref)
        out_ref[0:1, 0:1] = jnp.sum(trk_ref[...], keepdims=True)  # Tr(P^T A P)
        out_ref[0:1, 1:2] = m2_ref[...]                            # 2m
        out_ref[0:1, 2:2 + k] = dtp_ref[...]                       # P^T d


def _modularity_levels_impl(a_stack, p_stack, res, max_strip_rows, n_split_req):
    """Negative soft modularity per level. a_stack: (L,N,N), p_stack: (L,N,k)."""
    L, N, _ = a_stack.shape
    k = p_stack.shape[-1]
    a_item = a_stack.dtype.itemsize

    # Generation-aware sizing: ~3/4 of physical VMEM scoped (96 MiB on
    # v5e/v6e, 48 MiB on v7x); ~70% of that for the double-buffered A strip
    # plus its in-kernel bf16 cast temp.
    vmem_cap = _vmem_capacity_bytes()
    vmem_limit = (vmem_cap * 3) // 4
    per_row = max(1, N * (2 * a_item + 4))
    budget_rows = max(32, int(vmem_limit * 0.7) // per_row)

    tm_cap = min(int(max_strip_rows), budget_rows)
    if tm_cap >= N:
        tm = N                                    # one full strip (any N is legal)
    else:
        tm = max(32, (tm_cap // 32) * 32)         # covers (8/16/32, 128) tiling

    n_strips = -(-N // tm)
    n_split = max(1, min(int(n_split_req), n_strips))   # v7x 2-TC load balance
    n_r = -(-n_strips // n_split)
    last_strip = n_strips - 1

    ncols_aug = 2 * k + 1
    out_w = _round_up(k + 2, 128)

    # Tiny P-side prep (L*N*k elements, negligible vs A):
    #   [P_hi | P_lo | 1] in bf16, plus P in f32 for the trace term.
    p_f32 = p_stack.astype(jnp.float32)
    p_hi = p_f32.astype(jnp.bfloat16)
    p_lo = (p_f32 - p_hi.astype(jnp.float32)).astype(jnp.bfloat16)
    ones = jnp.ones((L, N, 1), jnp.bfloat16)
    p_aug = jnp.concatenate([p_hi, p_lo, ones], axis=-1)   # (L, N, 2k+1)
    res = res.astype(jnp.float32)

    def strip_index(l, c, r):
        # Clamp so fully-out-of-range steps re-target the last strip (same
        # block index as the previous step -> no redundant DMA; contribution
        # is zeroed by the in-kernel row mask).
        return (l, jnp.minimum(c * n_r + r, last_strip), 0)

    kernel = functools.partial(_modularity_kernel, n_rows=N)

    out = pl.pallas_call(
        kernel,
        out_shape=jax.ShapeDtypeStruct((L, n_split, 8, out_w), jnp.float32),
        grid=(L, n_split, n_r),
        in_specs=[
            pl.BlockSpec((None, tm, N), strip_index),                    # A strip (native dtype)
            pl.BlockSpec((None, N, ncols_aug), lambda l, c, r: (l, 0, 0)),  # [P_hi|P_lo|1] resident
            pl.BlockSpec((None, tm, k), strip_index),                    # P rows (f32)
        ],
        out_specs=pl.BlockSpec((None, None, 8, out_w),
                               lambda l, c, r: (l, c, 0, 0)),
        scratch_shapes=[
            pltpu.VMEM((1, k), jnp.float32),    # Tr(P^T A P) lane partials
            pltpu.VMEM((1, 1), jnp.float32),    # 2m
            pltpu.VMEM((1, k), jnp.float32),    # P^T d
        ],
        compiler_params=pltpu.CompilerParams(
            dimension_semantics=("parallel", "parallel", "arbitrary"),
            vmem_limit_bytes=int(vmem_limit),
        ),
        cost_estimate=pl.CostEstimate(
            flops=int(2 * L * N * N * ncols_aug),
            transcendentals=0,
            bytes_accessed=int(L * N * N * a_item
                               + L * N * (ncols_aug * 2 + k * 4)
                               + L * n_split * 8 * out_w * 4),
        ),
    )(a_stack, p_aug, p_f32)

    # Cheap nonlinear finalize on (L, n_split, k+2) partials.
    parts = out[:, :, 0, :]                              # (L, n_split, out_w)
    tr = jnp.sum(parts[..., 0], axis=1)                  # (L,)
    m2 = jnp.sum(parts[..., 1], axis=1)                  # (L,)
    dtp = jnp.sum(parts[..., 2:2 + k], axis=1)           # (L, k)
    null = jnp.sum(dtp * dtp, axis=-1)                   # ||P^T d||^2
    safe_m2 = jnp.where(m2 > 0.0, m2, 1.0)               # empty-graph guard
    q = (tr - res * null / safe_m2) / safe_m2
    return jnp.where(m2 > 0.0, -q, 0.0)


_modularity_levels_jit = jax.jit(_modularity_levels_impl, static_argnums=(3, 4))


def modularity_levels_pallas(a_stack, p_stack, res, max_strip_rows=4096, n_split=2):
    """Negative soft modularity for a stack of same-shaped (A, P) levels."""
    return _modularity_levels_jit(a_stack, p_stack, res,
                                  int(max_strip_rows), int(n_split))


class ModularityLoss:
    """JAX/Pallas port of the PyTorch ModularityLoss module."""

    def __init__(self, max_strip_rows=4096, n_split=2):
        self.max_strip_rows = int(max_strip_rows)
        self.n_split = int(n_split)

    def __call__(self, all_A, all_P, resolutions=None):
        n_levels = len(all_A)
        if resolutions:
            res_list = [float(resolutions[i]) for i in range(n_levels)]
        else:
            res_list = [1.0] * n_levels

        a_list = [jnp.asarray(A) for A in all_A]
        p_list = [jnp.asarray(P) for P in all_P]
        res_arr = jnp.asarray(res_list, dtype=jnp.float32)

        same_shape = (
            n_levels > 0
            and len({(a.shape, p.shape) for a, p in zip(a_list, p_list)}) == 1
        )
        if same_shape:
            # Batch all levels: one dispatch, level axis is a "parallel" grid axis.
            mods = modularity_levels_pallas(
                jnp.stack(a_list), jnp.stack(p_list), res_arr,
                max_strip_rows=self.max_strip_rows, n_split=self.n_split)
        elif n_levels > 0:
            # TODO(synk): heterogeneous level shapes fall back to one pallas_call
            # per level (still no host sync until the end).
            mods = jnp.concatenate([
                modularity_levels_pallas(a[None], p[None], res_arr[i:i + 1],
                                         max_strip_rows=self.max_strip_rows,
                                         n_split=self.n_split)
                for i, (a, p) in enumerate(zip(a_list, p_list))
            ])
        else:
            mods = jnp.zeros((0,), jnp.float32)

        loss = jnp.sum(mods).reshape(1)          # matches torch.Tensor([0]) shape
        loss_list = [float(v) for v in jax.device_get(mods)]   # single host sync
        return loss, loss_list


if __name__ == "__main__":
    key = jax.random.PRNGKey(0)
    N, k, levels = 150, 8, 3

    all_A, all_P = [], []
    for _ in range(levels):
        key, kg, ka, kp = jax.random.split(key, 4)
        groups = jax.random.randint(kg, (N,), 0, k)
        same = groups[:, None] == groups[None, :]
        prob = jnp.where(same, 0.5, 0.05)
        a_rand = (jax.random.uniform(ka, (N, N)) < prob).astype(jnp.float32)
        A = jnp.maximum(a_rand, a_rand.T)                    # symmetric 0/1 adjacency
        logits = 3.0 * jax.nn.one_hot(groups, k) + 0.5 * jax.random.normal(kp, (N, k))
        P = jax.nn.softmax(logits, axis=-1)                  # soft assignments
        all_A.append(A)
        all_P.append(P)

    resolutions = [1.0, 0.8, 0.5]

    loss_fn = ModularityLoss()
    loss, loss_list = loss_fn(all_A, all_P, resolutions)
    jax.block_until_ready(loss)

    # Also exercise the ragged multi-strip reduction + 2-way split path.
    mods_strips = modularity_levels_pallas(
        jnp.stack(all_A), jnp.stack(all_P),
        jnp.asarray(resolutions, jnp.float32), max_strip_rows=64, n_split=2)
    jax.block_until_ready(mods_strips)

    # Plain-JAX reference (same math, no Pallas).
    def ref_mod(A, P, res):
        AP = A @ P
        tr = jnp.sum(AP * P)
        d = jnp.sum(A, axis=1, keepdims=True)
        m2 = jnp.sum(d)
        dtP = jnp.sum(d * P, axis=0)
        return -(tr - res * jnp.sum(dtP * dtP) / m2) / m2

    ref_mods = jnp.stack([ref_mod(A, P, r)
                          for A, P, r in zip(all_A, all_P, resolutions)])
    ref_loss = jnp.sum(ref_mods)

    assert jnp.allclose(loss[0], ref_loss, rtol=1e-4, atol=1e-5), (loss, ref_loss)
    assert jnp.allclose(mods_strips, ref_mods, rtol=1e-4, atol=1e-5), (
        mods_strips, ref_mods)
    assert len(loss_list) == levels

    # Default-resolution path (res = 1 per level).
    loss_def, _ = loss_fn(all_A, all_P)
    ref_def = jnp.sum(jnp.stack([ref_mod(A, P, 1.0) for A, P in zip(all_A, all_P)]))
    assert jnp.allclose(loss_def[0], ref_def, rtol=1e-4, atol=1e-5), (loss_def, ref_def)

    print("KERNEL_OK")
</pallas_src>

<mosaic_0001>
module attributes {stable_mosaic.version = 11 : i64} {
  func.func @_modularity_kernel(%arg0: i32, %arg1: i32, %arg2: i32, %arg3: memref<1x150x150xf32, #tpu.memory_space<vmem>>, %arg4: memref<1x150x17xbf16, #tpu.memory_space<vmem>>, %arg5: memref<1x150x8xf32, #tpu.memory_space<vmem>>, %arg6: memref<1x1x8x128xf32, #tpu.memory_space<vmem>>, %arg7: memref<1x8xf32, #tpu.memory_space<vmem>>, %arg8: memref<1x1xf32, #tpu.memory_space<vmem>>, %arg9: memref<1x8xf32, #tpu.memory_space<vmem>>) attributes {dimension_semantics = [#tpu.dimension_semantics<parallel>, #tpu.dimension_semantics<parallel>, #tpu.dimension_semantics<arbitrary>], iteration_bounds = array<i64: 3, 1, 1>, scalar_prefetch = 0 : i64, scratch_operands = 3 : i64, tpu.core_type = #tpu.core_type<tc>, window_params = [{transform_indices = @transform_0, window_bounds = array<i64: 1, 150, 150>}, {transform_indices = @transform_1, window_bounds = array<i64: 1, 150, 17>}, {transform_indices = @transform_2, window_bounds = array<i64: 1, 150, 8>}, {transform_indices = @transform_3, window_bounds = array<i64: 1, 1, 8, 128>}]} {
    %c0_i32 = arith.constant 0 : i32
    %0 = arith.cmpi eq, %arg2, %c0_i32 : i32
    %1 = arith.extui %0 : i1 to i32
    %c0_i32_0 = arith.constant 0 : i32
    %2 = arith.cmpi ne, %1, %c0_i32_0 : i32
    scf.if %2 {
      %cst_29 = arith.constant 0.000000e+00 : f32
      %52 = vector.broadcast %cst_29 : f32 to vector<1x8xf32>
      %c0_30 = arith.constant 0 : index
      %c0_31 = arith.constant 0 : index
      %53 = vector.load %arg7[%c0_30, %c0_31] : memref<1x8xf32, #tpu.memory_space<vmem>>, vector<1x8xf32>
      tpu.vector_store %arg7[%c0_30, %c0_31], %52 {strides = array<i32>} : memref<1x8xf32, #tpu.memory_space<vmem>>, vector<1x8xf32>,
      %cst_32 = arith.constant 0.000000e+00 : f32
      %54 = vector.broadcast %cst_32 : f32 to vector<1x1xf32>
      %c0_33 = arith.constant 0 : index
      %c0_34 = arith.constant 0 : index
      %55 = vector.load %arg8[%c0_33, %c0_34] : memref<1x1xf32, #tpu.memory_space<vmem>>, vector<1x1xf32>
      tpu.vector_store %arg8[%c0_33, %c0_34], %54 {strides = array<i32>} : memref<1x1xf32, #tpu.memory_space<vmem>>, vector<1x1xf32>,
      %cst_35 = arith.constant 0.000000e+00 : f32
      %56 = vector.broadcast %cst_35 : f32 to vector<1x8xf32>
      %c0_36 = arith.constant 0 : index
      %c0_37 = arith.constant 0 : index
      %57 = vector.load %arg9[%c0_36, %c0_37] : memref<1x8xf32, #tpu.memory_space<vmem>>, vector<1x8xf32>
      tpu.vector_store %arg9[%c0_36, %c0_37], %56 {strides = array<i32>} : memref<1x8xf32, #tpu.memory_space<vmem>>, vector<1x8xf32>,
    } else {
    }
    %c1_i32 = arith.constant 1 : i32
    %3 = arith.muli %arg1, %c1_i32 : i32
    %4 = arith.addi %3, %arg2 : i32
    %c150_i32 = arith.constant 150 : i32
    %5 = arith.muli %4, %c150_i32 : i32
    %6 = tpu.iota {dimensions = array<i32: 0>} : vector<150x1xi32>
    %7 = vector.broadcast %5 : i32 to vector<150x1xi32>
    %8 = arith.addi %6, %7 : vector<150x1xi32>
    %c150_i32_1 = arith.constant 150 : i32
    %9 = vector.broadcast %c150_i32_1 : i32 to vector<150x1xi32>
    %10 = arith.cmpi slt, %8, %9 : vector<150x1xi32>
    %c0 = arith.constant 0 : index
    %c0_2 = arith.constant 0 : index
    %c0_3 = arith.constant 0 : index
    %11 = vector.load %arg3[%c0, %c0_2, %c0_3] : memref<1x150x150xf32, #tpu.memory_space<vmem>>, vector<1x150x150xf32>
    %12 = vector.shape_cast %11 : vector<1x150x150xf32> to vector<150x150xf32>
    %13 = arith.truncf %12 : vector<150x150xf32> to vector<150x150xbf16>
    %c0_4 = arith.constant 0 : index
    %c0_5 = arith.constant 0 : index
    %c0_6 = arith.constant 0 : index
    %14 = vector.load %arg4[%c0_4, %c0_5, %c0_6] : memref<1x150x17xbf16, #tpu.memory_space<vmem>>, vector<1x150x17xbf16>
    %15 = vector.shape_cast %14 : vector<1x150x17xbf16> to vector<150x17xbf16>
    %cst = arith.constant dense<0.000000e+00> : vector<150x17xf32>
    %16 = tpu.matmul %13, %15, %cst {dimension_numbers = #tpu.dot_dimension_numbers<[1], [0], [0], [1], [0, 0, 1, 1], [], []>} : vector<150x150xbf16>, vector<150x17xbf16>, vector<150x17xf32> -> vector<150x17xf32>
    %cst_7 = arith.constant 0.000000e+00 : f32
    %17 = vector.shape_cast %10 : vector<150x1xi1> to vector<150x1xi1>
    %18 = vector.broadcast %17 : vector<150x1xi1> to vector<150x17xi1>
    %19 = vector.broadcast %cst_7 : f32 to vector<150x17xf32>
    %20 = arith.select %18, %16, %19 : vector<150x17xi1>, vector<150x17xf32>
    %21 = vector.extract_strided_slice %20 {offsets = [0, 0], sizes = [150, 8], strides = [1, 1]} : vector<150x17xf32> to vector<150x8xf32>
    %22 = vector.extract_strided_slice %20 {offsets = [0, 8], sizes = [150, 8], strides = [1, 1]} : vector<150x17xf32> to vector<150x8xf32>
    %23 = arith.addf %21, %22 : vector<150x8xf32>
    %24 = vector.extract_strided_slice %20 {offsets = [0, 16], sizes = [150, 1], strides = [1, 1]} : vector<150x17xf32> to vector<150x1xf32>
    %c0_8 = arith.constant 0 : index
    %c0_9 = arith.constant 0 : index
    %c0_10 = arith.constant 0 : index
    %25 = vector.load %arg5[%c0_8, %c0_9, %c0_10] : memref<1x150x8xf32, #tpu.memory_space<vmem>>, vector<1x150x8xf32>
    %26 = vector.shape_cast %25 : vector<1x150x8xf32> to vector<150x8xf32>
    %cst_11 = arith.constant 0.000000e+00 : f32
    %27 = vector.shape_cast %10 : vector<150x1xi1> to vector<150x1xi1>
    %28 = vector.broadcast %27 : vector<150x1xi1> to vector<150x8xi1>
    %29 = vector.broadcast %cst_11 : f32 to vector<150x8xf32>
    %30 = arith.select %28, %26, %29 : vector<150x8xi1>, vector<150x8xf32>
    %c0_12 = arith.constant 0 : index
    %c0_13 = arith.constant 0 : index
    %31 = vector.load %arg7[%c0_12, %c0_13] : memref<1x8xf32, #tpu.memory_space<vmem>>, vector<1x8xf32>
    %32 = arith.mulf %23, %30 : vector<150x8xf32>
    %cst_14 = arith.constant dense<0.000000e+00> : vector<8xf32>
    %33 = vector.multi_reduction <add>, %32, %cst_14 [0] : vector<150x8xf32> to vector<8xf32>
    %34 = vector.shape_cast %33 : vector<8xf32> to vector<1x8xf32>
    %35 = arith.addf %31, %34 : vector<1x8xf32>
    %c0_15 = arith.constant 0 : index
    %c0_16 = arith.constant 0 : index
    %36 = vector.load %arg7[%c0_15, %c0_16] : memref<1x8xf32, #tpu.memory_space<vmem>>, vector<1x8xf32>
    tpu.vector_store %arg7[%c0_15, %c0_16], %35 {strides = array<i32>} : memref<1x8xf32, #tpu.memory_space<vmem>>, vector<1x8xf32>,
    %c0_17 = arith.constant 0 : index
    %c0_18 = arith.constant 0 : index
    %37 = vector.load %arg8[%c0_17, %c0_18] : memref<1x1xf32, #tpu.memory_space<vmem>>, vector<1x1xf32>
    %cst_19 = arith.constant dense<0.000000e+00> : vector<1xf32>
    %38 = vector.multi_reduction <add>, %24, %cst_19 [0] : vector<150x1xf32> to vector<1xf32>
    %39 = vector.shape_cast %38 : vector<1xf32> to vector<1x1xf32>
    %40 = arith.addf %37, %39 : vector<1x1xf32>
    %c0_20 = arith.constant 0 : index
    %c0_21 = arith.constant 0 : index
    %41 = vector.load %arg8[%c0_20, %c0_21] : memref<1x1xf32, #tpu.memory_space<vmem>>, vector<1x1xf32>
    tpu.vector_store %arg8[%c0_20, %c0_21], %40 {strides = array<i32>} : memref<1x1xf32, #tpu.memory_space<vmem>>, vector<1x1xf32>,
    %c0_22 = arith.constant 0 : index
    %c0_23 = arith.constant 0 : index
    %42 = vector.load %arg9[%c0_22, %c0_23] : memref<1x8xf32, #tpu.memory_space<vmem>>, vector<1x8xf32>
    %43 = vector.broadcast %24 : vector<150x1xf32> to vector<150x8xf32>
    %44 = arith.mulf %43, %30 : vector<150x8xf32>
    %cst_24 = arith.constant dense<0.000000e+00> : vector<8xf32>
    %45 = vector.multi_reduction <add>, %44, %cst_24 [0] : vector<150x8xf32> to vector<8xf32>
    %46 = vector.shape_cast %45 : vector<8xf32> to vector<1x8xf32>
    %47 = arith.addf %42, %46 : vector<1x8xf32>
    %c0_25 = arith.constant 0 : index
    %c0_26 = arith.constant 0 : index
    %48 = vector.load %arg9[%c0_25, %c0_26] : memref<1x8xf32, #tpu.memory_space<vmem>>, vector<1x8xf32>
    tpu.vector_store %arg9[%c0_25, %c0_26], %47 {strides = array<i32>} : memref<1x8xf32, #tpu.memory_space<vmem>>, vector<1x8xf32>,
    %c0_i32_27 = arith.constant 0 : i32
    %49 = arith.cmpi eq, %arg2, %c0_i32_27 : i32
    %50 = arith.extui %49 : i1 to i32
    %c0_i32_28 = arith.constant 0 : i32
    %51 = arith.cmpi ne, %50, %c0_i32_28 : i32
    scf.if %51 {
      %cst_29 = arith.constant 0.000000e+00 : f32
      %52 = vector.broadcast %cst_29 : f32 to vector<8x128xf32>
      %c0_30 = arith.constant 0 : index
      %c0_31 = arith.constant 0 : index
      %c0_32 = arith.constant 0 : index
      %c0_33 = arith.constant 0 : index
      %53 = vector.load %arg6[%c0_30, %c0_31, %c0_32, %c0_33] : memref<1x1x8x128xf32, #tpu.memory_space<vmem>>, vector<1x1x8x128xf32>
      %54 = vector.shape_cast %53 : vector<1x1x8x128xf32> to vector<8x128xf32>
      %55 = vector.shape_cast %52 : vector<8x128xf32> to vector<1x1x8x128xf32>
      tpu.vector_store %arg6[%c0_30, %c0_31, %c0_32, %c0_33], %55 {strides = array<i32>} : memref<1x1x8x128xf32, #tpu.memory_space<vmem>>, vector<1x1x8x128xf32>,
      %c0_34 = arith.constant 0 : index
      %c0_35 = arith.constant 0 : index
      %56 = vector.load %arg7[%c0_34, %c0_35] : memref<1x8xf32, #tpu.memory_space<vmem>>, vector<1x8xf32>
      %57 = vector.shape_cast %56 : vector<1x8xf32> to vector<1x1x8xf32>
      %cst_36 = arith.constant dense<0.000000e+00> : vector<1xf32>
      %58 = vector.multi_reduction <add>, %57, %cst_36 [1, 2] : vector<1x1x8xf32> to vector<1xf32>
      %59 = vector.shape_cast %58 : vector<1xf32> to vector<1x1x1xf32>
      %60 = vector.extract %59[0, 0, 0] : f32 from vector<1x1x1xf32>
      %61 = vector.broadcast %60 : f32 to vector<1x1xf32>
      %c0_37 = arith.constant 0 : index
      %c0_38 = arith.constant 0 : index
      %c0_39 = arith.constant 0 : index
      %c0_40 = arith.constant 0 : index
      %62 = vector.load %arg6[%c0_37, %c0_38, %c0_39, %c0_40] : memref<1x1x8x128xf32, #tpu.memory_space<vmem>>, vector<1x1x1x1xf32>
      %63 = vector.shape_cast %62 : vector<1x1x1x1xf32> to vector<1x1xf32>
      %64 = vector.shape_cast %61 : vector<1x1xf32> to vector<1x1x1x1xf32>
      tpu.vector_store %arg6[%c0_37, %c0_38, %c0_39, %c0_40], %64 {strides = array<i32>} : memref<1x1x8x128xf32, #tpu.memory_space<vmem>>, vector<1x1x1x1xf32>,
      %c0_41 = arith.constant 0 : index
      %c0_42 = arith.constant 0 : index
      %65 = vector.load %arg8[%c0_41, %c0_42] : memref<1x1xf32, #tpu.memory_space<vmem>>, vector<1x1xf32>
      %c0_43 = arith.constant 0 : index
      %c0_44 = arith.constant 0 : index
      %c0_45 = arith.constant 0 : index
      %c1 = arith.constant 1 : index
      %66 = vector.load %arg6[%c0_43, %c0_44, %c0_45, %c1] : memref<1x1x8x128xf32, #tpu.memory_space<vmem>>, vector<1x1x1x1xf32>
      %67 = vector.shape_cast %66 : vector<1x1x1x1xf32> to vector<1x1xf32>
      %68 = vector.shape_cast %65 : vector<1x1xf32> to vector<1x1x1x1xf32>
      tpu.vector_store %arg6[%c0_43, %c0_44, %c0_45, %c1], %68 {strides = array<i32>} : memref<1x1x8x128xf32, #tpu.memory_space<vmem>>, vector<1x1x1x1xf32>,
      %c0_46 = arith.constant 0 : index
      %c0_47 = arith.constant 0 : index
      %69 = vector.load %arg9[%c0_46, %c0_47] : memref<1x8xf32, #tpu.memory_space<vmem>>, vector<1x8xf32>
      %c0_48 = arith.constant 0 : index
      %c0_49 = arith.constant 0 : index
      %c0_50 = arith.constant 0 : index
      %c2 = arith.constant 2 : index
      %70 = vector.load %arg6[%c0_48, %c0_49, %c0_50, %c2] : memref<1x1x8x128xf32, #tpu.memory_space<vmem>>, vector<1x1x1x8xf32>
      %71 = vector.shape_cast %70 : vector<1x1x1x8xf32> to vector<1x8xf32>
      %72 = vector.shape_cast %69 : vector<1x8xf32> to vector<1x1x1x8xf32>
      tpu.vector_store %arg6[%c0_48, %c0_49, %c0_50, %c2], %72 {strides = array<i32>} : memref<1x1x8x128xf32, #tpu.memory_space<vmem>>, vector<1x1x1x8xf32>,
    } else {
    }
    return
  }
  func.func @transform_0(%arg0: i32, %arg1: i32, %arg2: i32) -> (i32, i32, i32) {
    %c1_i32 = arith.constant 1 : i32
    %0 = arith.muli %arg1, %c1_i32 : i32
    %1 = arith.addi %0, %arg2 : i32
    %c0_i32 = arith.constant 0 : i32
    %2 = arith.minsi %1, %c0_i32 : i32
    %c0_i32_0 = arith.constant 0 : i32
    %c0_i32_1 = arith.constant 0 : i32
    return %arg0, %2, %c0_i32_0 : i32, i32, i32
  }
  func.func @transform_1(%arg0: i32, %arg1: i32, %arg2: i32) -> (i32, i32, i32) {
    %c0_i32 = arith.constant 0 : i32
    %c0_i32_0 = arith.constant 0 : i32
    %c0_i32_1 = arith.constant 0 : i32
    return %arg0, %c0_i32, %c0_i32_0 : i32, i32, i32
  }
  func.func @transform_2(%arg0: i32, %arg1: i32, %arg2: i32) -> (i32, i32, i32) {
    %c1_i32 = arith.constant 1 : i32
    %0 = arith.muli %arg1, %c1_i32 : i32
    %1 = arith.addi %0, %arg2 : i32
    %c0_i32 = arith.constant 0 : i32
    %2 = arith.minsi %1, %c0_i32 : i32
    %c0_i32_0 = arith.constant 0 : i32
    %c0_i32_1 = arith.constant 0 : i32
    return %arg0, %2, %c0_i32_0 : i32, i32, i32
  }
  func.func @transform_3(%arg0: i32, %arg1: i32, %arg2: i32) -> (i32, i32, i32, i32) {
    %c0_i32 = arith.constant 0 : i32
    %c0_i32_0 = arith.constant 0 : i32
    %c0_i32_1 = arith.constant 0 : i32
    return %arg0, %arg1, %c0_i32, %c0_i32_0 : i32, i32, i32, i32
  }
}

</mosaic_0001>

<bundles_post_ra>
// kernel: _modularity_levels_impl.1
= control target key start
LH: loop header
LB: loop body
LE: loop exit
PB: predicated region body
PF: predicated region fallthrough
CT: control target
= control target key end

     0   :  { %s1437_s12 = smov 0   ;;  %s1439_s13 = smov 0   ;;  %s1869_s0 = inlined_call_operand.vmem [shape: f32[3,150,150], index: 0, kind: input, shape index: {}]   ;;  %s1870_s1 = inlined_call_operand.vmem [shape: bf16[3,150,17], index: 1, kind: input, shape index: {}]   ;;  %s1871_s2 = inlined_call_operand.vmem [shape: f32[3,150,8], index: 2, kind: input, shape index: {}]   ;;  %s1872_s3 = inlined_call_operand.vmem [shape: f32[3,1,8,128], index: 3, kind: output, shape index: {}]  }
   0x1   :  { %s1441_s14 = smov 0  }
   0x2 LB: > { %s32_s15 = sadd.s32 1, %s1403_s13  ;;  %p1287_p0 = scmp.ge.s32.totalorder %s1407_s14, 1  ;;  %s1407_s14 = sphi %s1441_s14, %s13_s14   ;;  %s1403_s13 = sphi %s1439_s13, %s1874_s13   ;;  %s1399_s12 = sphi %s1437_s12, %s1873_s12  }
   0x3   : > { %p34_p1 = scmp.ge.s32.totalorder %s32_s15, 3  ;;  %p217_p2 = scmp.lt.s32.totalorder %s1407_s14, 4 }
   0x5   : > { %s1876_s15 = smov (%p34_p1, %s32_s15), 0  ;;  %p218_p3 = pnand %p1287_p0, %p217_p2 }
   0x6   : > { %p272_p4 = scmp.lt.s32.totalorder (!%p218_p3), %s1399_s12, 2  ;;  %v1409_v0 = vmov (!%p218_p3), 0   ;;  %vm518_vm0 = vcmask (!%p218_p3), 179200   ;;  %vm549_vm1 = vcmask (!%p218_p3), 1042432   ;;  %vm924_vm2 = vcmask (!%p218_p3), 138368   ;;  %s1411_s24 = smov (!%p218_p3), 120  }
   0x7   : > { %221 = sbr.rel (%p218_p3) target bundleno = 676 (0x2a4), region = 32  ;;  %553 = vmatprep.subr.bf16.mxu0 (!%p218_p3), %v1409_v0  ;;  %1316 = vmatprep.subr.bf16.mxu1 (!%p218_p3), %v1409_v0  ;;  %vm318_vm4 = vcmask (!%p218_p3), 57344   ;;  %vm960_vm5 = vcmask (!%p218_p3), 136320   ;;  %vm320_vm6 = vcmask (!%p218_p3), 0   ;;  %s1414_s25 = smov (!%p218_p3), 112   ;;  %vm875_vm7 = vcmask (!%p218_p3), 64512  }
   0x8   : > { %vm911_vm8 = vcmask (!%p218_p3), 62464   ;;  %s1415_s30 = smov (!%p218_p3), 1   ;;  %s1416_s8 = smov (!%p218_p3), 2   ;;  %vm1157_vm9 = vcmask (!%p218_p3), 8200   ;;  %vm1168_vm10 = vcmask (!%p218_p3), 73744  }
   0xe   : > { %s1878_s12 = smov (!%p272_p4, %s1399_s12), 2 }
   0xf   : > { %s1336_s16 = smul.u32 304, %s1878_s12  ;;  %s1291_s4 = sshll.u32 %s1878_s12, 3 }
  0x10   : > { %s1337_s17 = smul.u32 76, %s1878_s12  ;;  %s312_s7 = scalar_lea.vmem %s1872_s3, %s1291_s4 }
  0x11   : > { %s1464_s20 = scalar_lea.vmem %s1869_s0, %s1336_s16  ;;  %s1338_s26 = smul.u32 152, %s1878_s12 }
  0x12   : > { %s1469_s23 = scalar_lea.vmem %s1870_s1, %s1337_s17  ;;  %v385_v1 = vld [vmem:[%s1464_s20 + $0x8] sm:$0xff]  ;;  %v387_v2 = vld [vmem:[%s1464_s20 + $0x18] sm:$0xff]  ;;  %v384_v17 = vld [vmem:[%s1464_s20] sm:$0xff] }
  0x13   : > { %v1375_v3 = vld [vmem:[%s1469_s23] sm:$0xff]   ;;  %v423_v4 = vpack.c.bf16 %v387_v2, %v385_v1  ;;  %v1376_v5 = vld [vmem:[%s1469_s23 + $0x8] sm:$0xff]   ;;  %v1377_v6 = vld [vmem:[%s1469_s23 + $0x10] sm:$0xff]   ;;  %s1694_s29 = scalar_lea.vmem %s1871_s2, %s1338_s26 }
  0x14   : > { %554 = vmatpush1.bf16.msra.mxu0 %v1375_v3  ;;  %1326 = vmatpush1.bf16.msra.mxu1 %v1375_v3  ;;  %v1378_v7 = vld [vmem:[%s1469_s23 + $0x18] sm:$0xff]   ;;  %v405_v8 = vld [vmem:[%s1464_s20 + $0xa8] sm:$0xff]  ;;  %v1379_v11 = vld [vmem:[%s1469_s23 + $0x20] sm:$0xff]  }
  0x15   : > { %555 = vmatprep.subr.bf16.mxu0 %v1409_v0  ;;  %1317 = vmatprep.subr.bf16.mxu1 %v1409_v0  ;;  %v407_v9 = vld [vmem:[%s1464_s20 + $0xb8] sm:$0xff]  ;;  %v1380_v12 = vld [vmem:[%s1469_s23 + $0x28] sm:$0xff]   ;;  %v1381_v13 = vld [vmem:[%s1469_s23 + $0x30] sm:$0xff]  }
  0x16   : > { %1302 = vmatprep.mubr.msk.bf16.mxu0 %vm518_vm0, %v423_v4  ;;  %v433_v10 = vpack.c.bf16 %v407_v9, %v405_v8  ;;  %v1382_v14 = vld [vmem:[%s1469_s23 + $0x38] sm:$0xff]   ;;  %v1383_v15 = vld [vmem:[%s1469_s23 + $0x40] sm:$0xff]   ;;  %v1384_v16 = vld [vmem:[%s1469_s23 + $0x48] ss:$0 sps:$4 sm:$0x77]  }
  0x17   : > { %v386_v18 = vld [vmem:[%s1464_s20 + $0x10] sm:$0xff]  ;;  %v389_v19 = vld [vmem:[%s1464_s20 + $0x28] sm:$0xff]  ;;  %v404_v20 = vld [vmem:[%s1464_s20 + $0xa0] sm:$0xff]  ;;  %v551_v22 = vsel %vm549_vm1, %v1384_v16, 0 }
  0x18   : > { %556 = vmatpush1.bf16.msra.mxu0 %v1376_v5  ;;  %1327 = vmatpush1.bf16.msra.mxu1 %v1376_v5  ;;  %v406_v21 = vld [vmem:[%s1464_s20 + $0xb0] sm:$0xff]  ;;  %v391_v23 = vld [vmem:[%s1464_s20 + $0x38] sm:$0xff]  ;;  %v409_v24 = vld [vmem:[%s1464_s20 + $0xc8] sm:$0xff]  ;;  %v422_v26 = vpack.c.bf16 %v386_v18, %v384_v17 }
  0x19   : > { %557 = vmatprep.subr.bf16.mxu0 %v1409_v0  ;;  %1318 = vmatprep.subr.bf16.mxu1 %v1409_v0  ;;  %v411_v25 = vld [vmem:[%s1464_s20 + $0xd8] sm:$0xff]  ;;  %v432_v27 = vpack.c.bf16 %v406_v21, %v404_v20  ;;  %v425_v28 = vpack.c.bf16 %v391_v23, %v389_v19  ;;  %v388_v30 = vld [vmem:[%s1464_s20 + $0x20] sm:$0xff]  ;;  %v390_v31 = vld [vmem:[%s1464_s20 + $0x30] sm:$0xff] }
  0x1a   : > { %1307 = vmatprep.mubr.msk.bf16.mxu1 %vm518_vm0, %v433_v10  ;;  %v435_v29 = vpack.c.bf16 %v411_v25, %v409_v24  ;;  %v393_v32 = vld [vmem:[%s1464_s20 + $0x48] sm:$0xff]  ;;  %v408_v33 = vld [vmem:[%s1464_s20 + $0xc0] sm:$0xff]  ;;  %v410_v34 = vld [vmem:[%s1464_s20 + $0xd0] sm:$0xff]  ;;  %v424_v38 = vpack.c.bf16 %v390_v31, %v388_v30 }
  0x1b   : > { %v395_v35 = vld [vmem:[%s1464_s20 + $0x58] sm:$0xff]  ;;  %v413_v36 = vld [vmem:[%s1464_s20 + $0xe8] sm:$0xff]  ;;  %v434_v39 = vpack.c.bf16 %v410_v34, %v408_v33  ;;  %v392_v42 = vld [vmem:[%s1464_s20 + $0x40] sm:$0xff] }
  0x1c   : > { %558 = vmatpush1.bf16.msra.mxu0 %v1377_v6  ;;  %1328 = vmatpush1.bf16.msra.mxu1 %v1377_v6  ;;  %v415_v37 = vld [vmem:[%s1464_s20 + $0xf8] sm:$0xff]  ;;  %v427_v40 = vpack.c.bf16 %v395_v35, %v393_v32  ;;  %v394_v43 = vld [vmem:[%s1464_s20 + $0x50] sm:$0xff]  ;;  %v397_v44 = vld [vmem:[%s1464_s20 + $0x68] sm:$0xff]  ;;  %v1410_v6 = vmov 16  }
  0x1d   : > { %559 = vmatprep.subr.bf16.mxu0 %v1409_v0  ;;  %1319 = vmatprep.subr.bf16.mxu1 %v1409_v0  ;;  %v437_v41 = vpack.c.bf16 %v415_v37, %v413_v36  ;;  %v412_v45 = vld [vmem:[%s1464_s20 + $0xe0] sm:$0xff]  ;;  %v414_v46 = vld [vmem:[%s1464_s20 + $0xf0] sm:$0xff]  ;;  %v399_v47 = vld [vmem:[%s1464_s20 + $0x78] sm:$0xff]  ;;  %v426_v50 = vpack.c.bf16 %v394_v43, %v392_v42 }
  0x1e   : > { %v417_v48 = vld [vmem:[%s1464_s20 + $0x108] sm:$0xff]  ;;  %v419_v49 = vld [vmem:[%s1464_s20 + $0x118] sm:$0xff]  ;;  %v436_v51 = vpack.c.bf16 %v414_v46, %v412_v45  ;;  %v429_v52 = vpack.c.bf16 %v399_v47, %v397_v44  ;;  %v396_v54 = vld [vmem:[%s1464_s20 + $0x60] sm:$0xff]  ;;  %1373 = vset.pattern.permute.xlu1 %v1410_v6  ;;  %1374 = vset.pattern.permute.xlu0 %v1410_v6 }
  0x1f   : > { %v439_v53 = vpack.c.bf16 %v419_v49, %v417_v48  ;;  %v398_v55 = vld [vmem:[%s1464_s20 + $0x70] sm:$0xff]  ;;  %v416_v56 = vld [vmem:[%s1464_s20 + $0x100] sm:$0xff]  ;;  %v401_v58 = vld [vmem:[%s1464_s20 + $0x88] sm:$0xff] }
  0x20   : > { %560 = vmatpush1.bf16.msra.mxu0 %v1378_v7  ;;  %1329 = vmatpush1.bf16.msra.mxu1 %v1378_v7  ;;  %v418_v57 = vld [vmem:[%s1464_s20 + $0x110] sm:$0xff]  ;;  %v403_v59 = vld [vmem:[%s1464_s20 + $0x98] sm:$0xff]  ;;  %v421_v60 = vld [vmem:[%s1464_s20 + $0x128] sm:$0x3f]  ;;  %v428_v61 = vpack.c.bf16 %v398_v55, %v396_v54 }
  0x21   : > { %561 = vmatprep.subr.bf16.mxu0 %v1409_v0  ;;  %1320 = vmatprep.subr.bf16.mxu1 %v1409_v0  ;;  %v438_v62 = vpack.c.bf16 %v418_v57, %v416_v56  ;;  %v431_v63 = vpack.c.bf16 %v403_v59, %v401_v58  ;;  %v400_v1 = vld [vmem:[%s1464_s20 + $0x80] sm:$0xff]  ;;  %v402_v2 = vld [vmem:[%s1464_s20 + $0x90] sm:$0xff] }
  0x22   : > { %v420_v3 = vld [vmem:[%s1464_s20 + $0x120] sm:$0x3f]  ;;  %v430_v4 = vpack.c.bf16 %v402_v2, %v400_v1 }
  0x23   : > { %v440_v5 = vpack.c.bf16 %v420_v3, %v420_v3 }
  0x24   : > { %562 = vmatpush1.bf16.msra.mxu0 %v1379_v11  ;;  %1330 = vmatpush1.bf16.msra.mxu1 %v1379_v11 }
  0x25   : > { %563 = vmatprep.subr.bf16.mxu0 %v1409_v0  ;;  %1321 = vmatprep.subr.bf16.mxu1 %v1409_v0 }
  0x28   : > { %564 = vmatpush1.bf16.msra.mxu0 %v1380_v12  ;;  %1331 = vmatpush1.bf16.msra.mxu1 %v1380_v12 }
  0x29   : > { %565 = vmatprep.subr.bf16.mxu0 %v1409_v0  ;;  %1322 = vmatprep.subr.bf16.mxu1 %v1409_v0 }
  0x2c   : > { %566 = vmatpush1.bf16.msra.mxu0 %v1381_v13  ;;  %1332 = vmatpush1.bf16.msra.mxu1 %v1381_v13 }
  0x2d   : > { %567 = vmatprep.subr.bf16.mxu0 %v1409_v0  ;;  %1323 = vmatprep.subr.bf16.mxu1 %v1409_v0 }
  0x30   : > { %568 = vmatpush1.bf16.msra.mxu0 %v1382_v14  ;;  %1333 = vmatpush1.bf16.msra.mxu1 %v1382_v14 }
  0x31   : > { %569 = vmatprep.subr.bf16.mxu0 %v1409_v0  ;;  %1324 = vmatprep.subr.bf16.mxu1 %v1409_v0 }
  0x34   : > { %570 = vmatpush1.bf16.msra.mxu0 %v1383_v15  ;;  %1334 = vmatpush1.bf16.msra.mxu1 %v1383_v15 }
  0x35   : > { %571 = vmatprep.subr.bf16.mxu0 %v1409_v0  ;;  %1325 = vmatprep.subr.bf16.mxu1 %v1409_v0  ;;  %v441_v0 = vpack.c.bf16 %v421_v60, %v421_v60 }
  0x38   : > { %572 = vmatpush1.bf16.msra.mxu0 %v551_v22  ;;  %1335 = vmatpush1.bf16.msra.mxu1 %v551_v22 }
  0x3b   : > { %586 = vmatmul.mubr.bf16.vlgmr.msra.gmra.mrb[0].mxu0 %v422_v26  ;;  %626 = vmatmul.mubr.bf16.vlgmr.msra.gmra.mrb[0].mxu1 %v432_v27 }
  0x3c   : > { %1303 = vmatprep.mubr.msk.bf16.mxu0 %vm518_vm0, %v425_v28  ;;  %1308 = vmatprep.mubr.msk.bf16.mxu1 %vm518_vm0, %v435_v29 }
  0x43   : > { %594 = vmatmul.mubr.bf16.gmra.mrb[4].mxu0 %v424_v38  ;;  %634 = vmatmul.mubr.bf16.gmra.mrb[4].mxu1 %v434_v39 }
  0x44   : > { %1304 = vmatprep.mubr.msk.bf16.mxu0 %vm518_vm0, %v427_v40  ;;  %1309 = vmatprep.mubr.msk.bf16.mxu1 %vm518_vm0, %v437_v41 }
  0x4b   : > { %602 = vmatmul.mubr.bf16.gmra.mrb[8].mxu0 %v426_v50  ;;  %642 = vmatmul.mubr.bf16.gmra.mrb[8].mxu1 %v436_v51 }
  0x4c   : > { %1305 = vmatprep.mubr.msk.bf16.mxu0 %vm518_vm0, %v429_v52  ;;  %1310 = vmatprep.mubr.msk.bf16.mxu1 %vm518_vm0, %v439_v53 }
  0x53   : > { %610 = vmatmul.mubr.bf16.gmra.mrb[12].mxu0 %v428_v61  ;;  %650 = vmatmul.mubr.bf16.gmra.mrb[12].mxu1 %v438_v62 }
  0x54   : > { %1306 = vmatprep.mubr.msk.bf16.mxu0 %vm518_vm0, %v431_v63  ;;  %1311 = vmatprep.mubr.msk.bf16.mxu1 %vm518_vm0, %v441_v0  ;;  %v325_v0 = vlaneseq }
  0x56   : > { %v326_v6 = vshrl.u32 %v325_v0, 7  ;;  %v1707_v0 = vld [vmem:[%s1694_s29 + $0x10] sm:$0xff] }
  0x5b   : > { %618 = vmatmul.mubr.bf16.gmra.mrb[16].mxu0 %v430_v4  ;;  %658 = vmatmul.mubr.bf16.gmra.mrb[16].mxu1 %v440_v5 }
 0x10e   : > { %v1547_v7 = vpop.f32.mrb[0].mxu0  ;;  %v1549_v8 = vpop.f32.mrb[0].mxu1 }
 0x10f   : > { %741 = vrot.lane.b32.xlu0 %v1547_v7, %s1411_s24  ;;  %v589_v9 = vpop.f32.mrb[1].mxu0  ;;  %v629_v10 = vpop.f32.mrb[1].mxu1  ;;  %v925_v13 = vsel %vm924_vm2, %v1547_v7, 0.0  ;;  %v944_v3 = vsel %vm924_vm2, %v1549_v8, 0.0 }
 0x110   : > { %v1553_v11 = vpop.f32.mrb[2].mxu0  ;;  %v1555_v12 = vpop.f32.mrb[2].mxu1 }
 0x111   : > { %v926_v14 = vsel %vm924_vm2, %v1553_v11, 0.0  ;;  %v592_v15 = vpop.f32.mrb[3].mxu0  ;;  %v632_v16 = vpop.f32.mrb[3].mxu1  ;;  %v946_v5 = vsel %vm924_vm2, %v1555_v12, 0.0 }
 0x112   : > { %v927_v17 = vadd.f32 %v926_v14, %v925_v13  ;;  %v1639_v15 = vadd.s32 144, %v326_v6 }
 0x113   : > { %743 = vrot.lane.b32.xlu0 %v1553_v11, %s1411_s24 }
 0x114   : > { %vm383_vm3 = vcmp.lt.s32.totalorder %v1639_v15, 150 }
 0x116   : > { %v1563_v18 = vpop.f32.mrb[4].mxu0  ;;  %v1565_v19 = vpop.f32.mrb[4].mxu1 }
 0x117   : > { %v928_v20 = vsel %vm924_vm2, %v1563_v18, 0.0  ;;  %745 = vrot.lane.b32.xlu1 %v1563_v18, %s1411_s24  ;;  %v597_v21 = vpop.f32.mrb[5].mxu0  ;;  %v637_v22 = vpop.f32.mrb[5].mxu1  ;;  %v948_v10 = vsel %vm924_vm2, %v1565_v19, 0.0 }
 0x118   : > { %v929_v23 = vadd.f32 %v928_v20, %v927_v17  ;;  %v1571_v24 = vpop.f32.mrb[6].mxu0  ;;  %v1573_v25 = vpop.f32.mrb[6].mxu1 }
 0x119   : > { %v930_v26 = vsel %vm924_vm2, %v1571_v24, 0.0  ;;  %v600_v27 = vpop.f32.mrb[7].mxu0  ;;  %v640_v28 = vpop.f32.mrb[7].mxu1  ;;  %v950_v14 = vsel %vm924_vm2, %v1573_v25, 0.0 }
 0x11a   : > { %v931_v29 = vadd.f32 %v930_v26, %v929_v23 }
 0x11b   : > { %747 = vrot.lane.b32.xlu1 %v1571_v24, %s1411_s24 }
 0x11e   : > { %v1579_v30 = vpop.f32.mrb[8].mxu0  ;;  %v1581_v31 = vpop.f32.mrb[8].mxu1 }
 0x11f   : > { %v932_v32 = vsel %vm924_vm2, %v1579_v30, 0.0  ;;  %749 = vrot.lane.b32.xlu0 %v1579_v30, %s1411_s24  ;;  %v605_v33 = vpop.f32.mrb[9].mxu0  ;;  %v645_v34 = vpop.f32.mrb[9].mxu1  ;;  %v952_v17 = vsel %vm924_vm2, %v1581_v31, 0.0 }
 0x120   : > { %v933_v35 = vadd.f32 %v932_v32, %v931_v29  ;;  %v1587_v36 = vpop.f32.mrb[10].mxu0  ;;  %v1589_v37 = vpop.f32.mrb[10].mxu1  ;;  %v1412_v29 = vmov 0.0  }
 0x121   : > { %v934_v38 = vsel %vm924_vm2, %v1587_v36, 0.0  ;;  %751 = vrot.lane.b32.xlu1 %v1587_v36, %s1411_s24  ;;  %v608_v39 = vpop.f32.mrb[11].mxu0  ;;  %v648_v40 = vpop.f32.mrb[11].mxu1  ;;  %v954_v21 = vsel %vm924_vm2, %v1589_v37, 0.0  ;;  %319 = vst.msk [vmem:[#allocation2] sm:$0x1] %vm318_vm4, %v1412_v29  ;;  %1134 = vst [vmem:[%s312_s7] sm:$0xff] %v1412_v29 }
 0x122   : > { %v935_v41 = vadd.f32 %v934_v38, %v933_v35  ;;  %322 = vst.msk [vmem:[#allocation4] sm:$0x1] %vm318_vm4, %v1412_v29 }
 0x123   : > { %321 = vst.msk [vmem:[#allocation3] sm:$0x1] %vm320_vm6, %v1412_v29 }
 0x126   : > { %v1595_v42 = vpop.f32.mrb[12].mxu0  ;;  %v1597_v43 = vpop.f32.mrb[12].mxu1 }
 0x127   : > { %v936_v44 = vsel %vm924_vm2, %v1595_v42, 0.0  ;;  %753 = vrot.lane.b32.xlu0 %v1595_v42, %s1411_s24  ;;  %v613_v45 = vpop.f32.mrb[13].mxu0  ;;  %v653_v46 = vpop.f32.mrb[13].mxu1  ;;  %v956_v23 = vsel %vm924_vm2, %v1597_v43, 0.0 }
 0x128   : > { %v937_v47 = vadd.f32 %v936_v44, %v935_v41  ;;  %v1603_v48 = vpop.f32.mrb[14].mxu0  ;;  %v1605_v49 = vpop.f32.mrb[14].mxu1  ;;  %v1413_v41 = vmov 1966171168  }
 0x129   : > { %v938_v50 = vsel %vm924_vm2, %v1603_v48, 0.0  ;;  %755 = vrot.lane.b32.xlu1 %v1603_v48, %s1411_s24  ;;  %v616_v51 = vpop.f32.mrb[15].mxu0  ;;  %v656_v52 = vpop.f32.mrb[15].mxu1  ;;  %v958_v28 = vsel %vm924_vm2, %v1605_v49, 0.0  ;;  %v971_v44 = vunpack.c.l.s4 %v1413_v41 }
 0x12a   : > { %v939_v53 = vadd.f32 %v938_v50, %v937_v47 }
 0x12b   : > { %v972_v46 = vunpack.c.0.s8 %v971_v44 }
 0x12d   : > { %v975_v50 = vsub.s32 %v972_v46, %v326_v6 }
 0x12e   : > { %v1611_v54 = vpop.f32.mrb[16].mxu0  ;;  %v659_v55 = vpop.f32.mrb[16].mxu1 }
 0x12f   : > { %v940_v56 = vsel %vm924_vm2, %v1611_v54, 0.0  ;;  %757 = vrot.lane.b32.xlu0 %v1611_v54, %s1411_s24  ;;  %v621_v57 = vpop.f32.mrb[17].mxu0  ;;  %v661_v58 = vpop.f32.mrb[17].mxu1  ;;  %v1656_v27 = vsel %vm383_vm3, %v659_v55, 0.0 }
 0x130   : > { %v941_v59 = vadd.f32 %v940_v56, %v939_v53  ;;  %v1617_v60 = vpop.f32.mrb[18].mxu0  ;;  %v662_v61 = vpop.f32.mrb[18].mxu1  ;;  %v961_v33 = vsel %vm960_vm5, %v1656_v27, 0.0  ;;  %v1698_v56 = vld [vmem:[%s1694_s29] sm:$0xff]  ;;  %v1701_v58 = vld [vmem:[%s1694_s29 + $0x8] sm:$0xff] }
 0x131   : > { %v942_v62 = vsel %vm924_vm2, %v1617_v60, 0.0  ;;  %759 = vrot.lane.b32.xlu1 %v1617_v60, %s1411_s24  ;;  %v624_v63 = vpop.f32.mrb[19].mxu0  ;;  %v663_v1 = vpop.f32.mrb[19].mxu1 }
 0x132   : > { %v943_v2 = vadd.f32 %v942_v62, %v941_v59 }
 0x133   : > { %761 = vrot.lane.b32.xlu0 %v1549_v8, %s1411_s24 }
 0x134   : > { %v945_v4 = vadd.f32 %v944_v3, %v943_v2 }
 0x135   : > { %763 = vrot.lane.b32.xlu1 %v1555_v12, %s1411_s24 }
 0x136   : > { %v947_v9 = vadd.f32 %v946_v5, %v945_v4  ;;  %v1714_v5 = vld [vmem:[%s1694_s29 + $0x18] sm:$0xff] }
 0x137   : > { %765 = vrot.lane.b32.xlu0 %v1565_v19, %s1411_s24 }
 0x138   : > { %v949_v13 = vadd.f32 %v948_v10, %v947_v9 }
 0x139   : > { %767 = vrot.lane.b32.xlu1 %v1573_v25, %s1411_s24 }
 0x13a   : > { %v951_v16 = vadd.f32 %v950_v14, %v949_v13  ;;  %v1720_v14 = vld [vmem:[%s1694_s29 + $0x20] sm:$0xff] }
 0x13b   : > { %769 = vrot.lane.b32.xlu0 %v1581_v31, %s1411_s24 }
 0x13c   : > { %v953_v20 = vadd.f32 %v952_v17, %v951_v16 }
 0x13d   : > { %771 = vrot.lane.b32.xlu1 %v1589_v37, %s1411_s24 }
 0x13e   : > { %v955_v22 = vadd.f32 %v954_v21, %v953_v20 }
 0x13f   : > { %773 = vrot.lane.b32.xlu0 %v1597_v43, %s1411_s24 }
 0x140   : > { %v957_v26 = vadd.f32 %v956_v23, %v955_v22  ;;  %v1725_v22 = vld [vmem:[%s1694_s29 + $0x28] sm:$0xff] }
 0x141   : > { %775 = vrot.lane.b32.xlu1 %v1605_v49, %s1411_s24 }
 0x142   : > { %v959_v32 = vadd.f32 %v958_v28, %v957_v26 }
 0x143   : > { %777 = vrot.lane.b32.xlu0 %v1656_v27, %s1411_s24 }
 0x144   : > { %v962_v34 = vadd.f32 %v961_v33, %v959_v32 }
 0x145   : > { %992 = vperm.xlu1 %1373, %v1547_v7  }
 0x146   : > { %v963_v35 = vrot.slane %v962_v34, 4 }
 0x147   : > { %996 = vperm.xlu0 %1374, %v1553_v11  }
 0x148   : > { %v964_v38 = vadd.f32 %v963_v35, %v962_v34 }
 0x149   : > { %1000 = vperm.xlu1 %1373, %v1563_v18  }
 0x14a   : > { %v965_v39 = vrot.slane %v964_v38, 2 }
 0x14b   : > { %1008 = vperm.xlu0 %1374, %v1579_v30  }
 0x14c   : > { %v966_v40 = vadd.f32 %v965_v39, %v964_v38  ;;  %v1737_v39 = vld [vmem:[%s1694_s29 + $0x38] sm:$0xff] }
 0x14d   : > { %1004 = vperm.xlu1 %1373, %v1571_v24  }
 0x14e   : > { %v967_v45 = vrot.slane %v966_v40, 1 }
 0x14f   : > { %1016 = vperm.xlu0 %1374, %v1595_v42  }
 0x150   : > { %v968_v47 = vadd.f32 %v967_v45, %v966_v40 }
 0x151   : > { %1012 = vperm.xlu1 %1373, %v1587_v36  }
 0x152   : > { %v976_v51 = vrot.slane %v968_v47, %v975_v50 }
 0x153   : > { %1024 = vperm.xlu0 %1374, %v1611_v54  }
 0x154   : > { %v983_v52 = vrot.slane %v976_v51, %v975_v50  ;;  %v1745_v51 = vld [vmem:[%s1694_s29 + $0x40] sm:$0xff] }
 0x155   : > { %1020 = vperm.xlu1 %1373, %v1603_v48  }
 0x157   : > { %1032 = vperm.xlu0 %1374, %v1549_v8  }
 0x159   : > { %1028 = vperm.xlu1 %1373, %v1617_v60  }
 0x15b   : > { %1040 = vperm.xlu0 %1374, %v1565_v19  }
 0x15d   : > { %1036 = vperm.xlu1 %1373, %v1555_v12  }
 0x15f   : > { %1048 = vperm.xlu0 %1374, %v1581_v31  }
 0x161   : > { %1044 = vperm.xlu1 %1373, %v1573_v25  }
 0x163   : > { %1056 = vperm.xlu0 %1374, %v1597_v43  }
 0x165   : > { %1052 = vperm.xlu1 %1373, %v1589_v37  }
 0x167   : > { %1064 = vperm.xlu0 %1374, %v1656_v27  }
 0x169   : > { %1060 = vperm.xlu1 %1373, %v1605_v49  }
 0x16b   : > { %984 = vrot.lane.b32.xlu0 %v983_v52, %s1414_s25 }
 0x181   : > { %v742_v53 = vpop.permute.xlu0 %741 }
 0x182   : > { %v798_v55 = vadd.f32 %v742_v53, %v1547_v7  ;;  %v1749_v53 = vld [vmem:[%s1694_s29 + $0x48] sm:$0xff] }
 0x184   : > { %v856_v61 = vmul.f32 %v1698_v56, %v798_v55 }
 0x185   : > { %v744_v57 = vpop.permute.xlu0 %743 }
 0x186   : > { %v799_v59 = vadd.f32 %v744_v57, %v1553_v11  ;;  %v876_v7 = vsel %vm875_vm7, %v856_v61, 0.0 }
 0x188   : > { %v857_v62 = vmul.f32 %v1701_v58, %v799_v59  ;;  %v1754_v59 = vld [vmem:[%s1694_s29 + $0x50] sm:$0xff] }
 0x189   : > { %v746_v63 = vpop.permute.xlu1 %745 }
 0x18a   : > { %v800_v1 = vadd.f32 %v746_v63, %v1563_v18  ;;  %v877_v2 = vsel %vm875_vm7, %v857_v62, 0.0 }
 0x18b   : > { %v878_v3 = vadd.f32 %v877_v2, %v876_v7  ;;  %v1760_v7 = vld [vmem:[%s1694_s29 + $0x58] sm:$0xff] }
 0x18c   : > { %v858_v4 = vmul.f32 %v1707_v0, %v800_v1 }
 0x18d   : > { %v748_v11 = vpop.permute.xlu1 %747 }
 0x18e   : > { %v801_v6 = vadd.f32 %v748_v11, %v1571_v24  ;;  %v879_v9 = vsel %vm875_vm7, %v858_v4, 0.0  ;;  %v1766_v11 = vld [vmem:[%s1694_s29 + $0x60] sm:$0xff] }
 0x18f   : > { %v880_v10 = vadd.f32 %v879_v9, %v878_v3 }
 0x190   : > { %v859_v13 = vmul.f32 %v1714_v5, %v801_v6 }
 0x191   : > { %v750_v18 = vpop.permute.xlu0 %749 }
 0x192   : > { %v802_v16 = vadd.f32 %v750_v18, %v1579_v30  ;;  %v881_v17 = vsel %vm875_vm7, %v859_v13, 0.0  ;;  %v1733_v30 = vld [vmem:[%s1694_s29 + $0x30] sm:$0xff]  ;;  %v1772_v18 = vld [vmem:[%s1694_s29 + $0x68] sm:$0xff] }
 0x193   : > { %v752_v20 = vpop.permute.xlu1 %751  ;;  %v882_v21 = vadd.f32 %v881_v17, %v880_v10 }
 0x194   : > { %v803_v24 = vadd.f32 %v752_v20, %v1587_v36  ;;  %v860_v23 = vmul.f32 %v1720_v14, %v802_v16 }
 0x196   : > { %v883_v26 = vsel %vm875_vm7, %v860_v23, 0.0  ;;  %v861_v28 = vmul.f32 %v1725_v22, %v803_v24  ;;  %v1778_v24 = vld [vmem:[%s1694_s29 + $0x70] sm:$0xff] }
 0x197   : > { %v884_v32 = vadd.f32 %v883_v26, %v882_v21 }
 0x198   : > { %v885_v33 = vsel %vm875_vm7, %v861_v28, 0.0 }
 0x199   : > { %v754_v34 = vpop.permute.xlu0 %753  ;;  %v886_v35 = vadd.f32 %v885_v33, %v884_v32  ;;  %v1784_v33 = vld [vmem:[%s1694_s29 + $0x78] sm:$0xff] }
 0x19a   : > { %v804_v38 = vadd.f32 %v754_v34, %v1595_v42 }
 0x19b   : > { %v756_v36 = vpop.permute.xlu1 %755 }
 0x19c   : > { %v805_v40 = vadd.f32 %v756_v36, %v1603_v48  ;;  %v862_v41 = vmul.f32 %v1733_v30, %v804_v38 }
 0x19e   : > { %v863_v44 = vmul.f32 %v1737_v39, %v805_v40  ;;  %v887_v45 = vsel %vm875_vm7, %v862_v41, 0.0  ;;  %v1790_v40 = vld [vmem:[%s1694_s29 + $0x80] sm:$0xff] }
 0x19f   : > { %v888_v46 = vadd.f32 %v887_v45, %v886_v35  ;;  %v835_v45 = vld [vmem:[%s1694_s29 + $0x90] sm:$0x3f] }
 0x1a0   : > { %v889_v47 = vsel %vm875_vm7, %v863_v44, 0.0 }
 0x1a1   : > { %v758_v50 = vpop.permute.xlu0 %757  ;;  %v890_v42 = vadd.f32 %v889_v47, %v888_v46 }
 0x1a2   : > { %v806_v52 = vadd.f32 %v758_v50, %v1611_v54  ;;  %v1797_v50 = vld [vmem:[%s1694_s29 + $0x88] sm:$0xff] }
 0x1a3   : > { %v760_v48 = vpop.permute.xlu1 %759 }
 0x1a4   : > { %v807_v55 = vadd.f32 %v760_v48, %v1617_v60  ;;  %v864_v57 = vmul.f32 %v1745_v51, %v806_v52 }
 0x1a5   : > { %v762_v61 = vpop.permute.xlu0 %761 }
 0x1a6   : > { %v865_v62 = vmul.f32 %v1749_v53, %v807_v55  ;;  %v808_v63 = vadd.f32 %v762_v61, %v1549_v8  ;;  %v891_v1 = vsel %vm875_vm7, %v864_v57, 0.0  ;;  %v1804_v57 = vsel %vm383_vm3, %v835_v45, 0.0 }
 0x1a7   : > { %v764_v54 = vpop.permute.xlu1 %763  ;;  %v892_v2 = vadd.f32 %v891_v1, %v890_v42 }
 0x1a8   : > { %v893_v3 = vsel %vm875_vm7, %v865_v62, 0.0  ;;  %v866_v60 = vmul.f32 %v1754_v59, %v808_v63  ;;  %v809_v4 = vadd.f32 %v764_v54, %v1555_v12 }
 0x1a9   : > { %v766_v6 = vpop.permute.xlu0 %765  ;;  %v894_v9 = vadd.f32 %v893_v3, %v892_v2 }
 0x1aa   : > { %v895_v8 = vsel %vm875_vm7, %v866_v60, 0.0  ;;  %v867_v10 = vmul.f32 %v1760_v7, %v809_v4  ;;  %v810_v13 = vadd.f32 %v766_v6, %v1565_v19 }
 0x1ab   : > { %v768_v16 = vpop.permute.xlu1 %767  ;;  %v896_v17 = vadd.f32 %v895_v8, %v894_v9 }
 0x1ac   : > { %v897_v20 = vsel %vm875_vm7, %v867_v10, 0.0  ;;  %v868_v12 = vmul.f32 %v1766_v11, %v810_v13  ;;  %v811_v21 = vadd.f32 %v768_v16, %v1573_v25 }
 0x1ad   : > { %v770_v23 = vpop.permute.xlu0 %769  ;;  %v898_v26 = vadd.f32 %v897_v20, %v896_v17 }
 0x1ae   : > { %v899_v28 = vsel %vm875_vm7, %v868_v12, 0.0  ;;  %v869_v19 = vmul.f32 %v1772_v18, %v811_v21  ;;  %v812_v32 = vadd.f32 %v770_v23, %v1581_v31 }
 0x1af   : > { %v772_v34 = vpop.permute.xlu1 %771  ;;  %v900_v35 = vadd.f32 %v899_v28, %v898_v26 }
 0x1b0   : > { %v901_v38 = vsel %vm875_vm7, %v869_v19, 0.0  ;;  %v870_v25 = vmul.f32 %v1778_v24, %v812_v32  ;;  %v813_v36 = vadd.f32 %v772_v34, %v1589_v37 }
 0x1b1   : > { %v774_v41 = vpop.permute.xlu0 %773  ;;  %v902_v44 = vadd.f32 %v901_v38, %v900_v35 }
 0x1b2   : > { %v903_v46 = vsel %vm875_vm7, %v870_v25, 0.0  ;;  %v871_v47 = vmul.f32 %v1784_v33, %v813_v36  ;;  %v814_v31 = vadd.f32 %v774_v41, %v1597_v43 }
 0x1b3   : > { %v776_v42 = vpop.permute.xlu1 %775  ;;  %v904_v52 = vadd.f32 %v903_v46, %v902_v44 }
 0x1b4   : > { %v905_v48 = vsel %vm875_vm7, %v871_v47, 0.0  ;;  %v872_v55 = vmul.f32 %v1790_v40, %v814_v31  ;;  %v815_v37 = vadd.f32 %v776_v42, %v1605_v49 }
 0x1b5   : > { %v778_v61 = vpop.permute.xlu0 %777  ;;  %v906_v62 = vadd.f32 %v905_v48, %v904_v52 }
 0x1b6   : > { %v907_v63 = vsel %vm875_vm7, %v872_v55, 0.0  ;;  %v873_v43 = vmul.f32 %v1797_v50, %v815_v37  ;;  %v816_v1 = vadd.f32 %v778_v61, %v1656_v27  ;;  %v855_v27 = vld [vmem:[#allocation2] sm:$0x1] }
 0x1b7   : > { %v908_v54 = vadd.f32 %v907_v63, %v906_v62 }
 0x1b8   : > { %v909_v2 = vsel %vm875_vm7, %v873_v43, 0.0  ;;  %v874_v3 = vmul.f32 %v1804_v57, %v816_v1 }
 0x1b9   : > { %v910_v60 = vadd.f32 %v909_v2, %v908_v54 }
 0x1ba   : > { %v912_v49 = vsel %vm911_vm8, %v874_v3, 0.0 }
 0x1bb   : > { %v913_v15 = vadd.f32 %v912_v49, %v910_v60 }
 0x1bd   : > { %v914_v4 = vrot.slane %v913_v15, 4 }
 0x1bf   : > { %v915_v6 = vadd.f32 %v914_v4, %v913_v15 }
 0x1c1   : > { %v916_v9 = vrot.slane %v915_v6, 2 }
 0x1c3   : > { %v917_v8 = vadd.f32 %v916_v9, %v915_v6 }
 0x1c4   : > { %v993_v10 = vpop.permute.xlu1 %992 }
 0x1c5   : > { %v1067_v13 = vmul.f32 %v993_v10, %v1698_v56  ;;  %v918_v16 = vrot.slane %v917_v8, 1 }
 0x1c6   : > { %v997_v17 = vpop.permute.xlu0 %996 }
 0x1c7   : > { %v1068_v20 = vmul.f32 %v997_v17, %v1701_v58  ;;  %v919_v12 = vadd.f32 %v918_v16, %v917_v8  ;;  %v1086_v23 = vsel %vm875_vm7, %v1067_v13, 0.0 }
 0x1c8   : > { %v1001_v21 = vpop.permute.xlu1 %1000 }
 0x1c9   : > { %v1087_v26 = vsel %vm875_vm7, %v1068_v20, 0.0  ;;  %v1069_v28 = vmul.f32 %v1001_v21, %v1707_v0  ;;  %v920_v19 = vadd.f32 %v919_v12, %v855_v27 }
 0x1ca   : > { %v1088_v32 = vadd.f32 %v1087_v26, %v1086_v23  ;;  %v1009_v34 = vpop.permute.xlu0 %1008 }
 0x1cb   : > { %v1089_v35 = vsel %vm875_vm7, %v1069_v28, 0.0  ;;  %922 = vst.msk [vmem:[#allocation2] sm:$0x1] %vm318_vm4, %v920_v19  ;;  %v1071_v38 = vmul.f32 %v1009_v34, %v1720_v14 }
 0x1cc   : > { %v1005_v56 = vpop.permute.xlu1 %1004  ;;  %v1090_v25 = vadd.f32 %v1089_v35, %v1088_v32 }
 0x1cd   : > { %v1070_v58 = vmul.f32 %v1005_v56, %v1714_v5  ;;  %v1093_v0 = vsel %vm875_vm7, %v1071_v38, 0.0  ;;  %v923_v56 = vld [vmem:[#allocation3] sm:$0x1] }
 0x1ce   : > { %v1017_v36 = vpop.permute.xlu0 %1016 }
 0x1cf   : > { %v1091_v41 = vsel %vm875_vm7, %v1070_v58, 0.0  ;;  %v1073_v46 = vmul.f32 %v1017_v36, %v1733_v30 }
 0x1d0   : > { %v1092_v44 = vadd.f32 %v1091_v41, %v1090_v25  ;;  %v1013_v45 = vpop.permute.xlu1 %1012 }
 0x1d1   : > { %v1072_v47 = vmul.f32 %v1013_v45, %v1725_v22  ;;  %v1097_v37 = vsel %vm875_vm7, %v1073_v46, 0.0 }
 0x1d2   : > { %v1094_v31 = vadd.f32 %v1093_v0, %v1092_v44  ;;  %v1025_v42 = vpop.permute.xlu0 %1024  ;;  %v1135_v52 = vld [vmem:[#allocation2] sm:$0x1] }
 0x1d3   : > { %v1095_v48 = vsel %vm875_vm7, %v1072_v47, 0.0  ;;  %v1136_v14 = vsel %vm318_vm4, %v1135_v52, 0.0  ;;  %v1075_v61 = vmul.f32 %v1025_v42, %v1745_v51  ;;  %v990_v42 = vld [vmem:[#allocation4] sm:$0x1] }
 0x1d4   : > { %v1096_v5 = vadd.f32 %v1095_v48, %v1094_v31  ;;  %1137 = vadd.xlane.f32.xlu1 %v1136_v14  ;;  %v1021_v55 = vpop.permute.xlu1 %1020 }
 0x1d5   : > { %v1074_v62 = vmul.f32 %v1021_v55, %v1737_v39  ;;  %v1101_v54 = vsel %vm875_vm7, %v1075_v61, 0.0 }
 0x1d6   : > { %v1098_v63 = vadd.f32 %v1097_v37, %v1096_v5  ;;  %v1033_v30 = vpop.permute.xlu0 %1032 }
 0x1d7   : > { %v1099_v22 = vsel %vm875_vm7, %v1074_v62, 0.0  ;;  %v1077_v2 = vmul.f32 %v1033_v30, %v1754_v59 }
 0x1d8   : > { %v1100_v43 = vadd.f32 %v1099_v22, %v1098_v63  ;;  %v1029_v1 = vpop.permute.xlu1 %1028 }
 0x1d9   : > { %v1076_v3 = vmul.f32 %v1029_v1, %v1749_v53  ;;  %v1105_v39 = vsel %vm875_vm7, %v1077_v2, 0.0 }
 0x1da   : > { %v1102_v60 = vadd.f32 %v1101_v54, %v1100_v43  ;;  %v1041_v49 = vpop.permute.xlu0 %1040 }
 0x1db   : > { %v1103_v15 = vsel %vm875_vm7, %v1076_v3, 0.0  ;;  %v1079_v6 = vmul.f32 %v1041_v49, %v1766_v11 }
 0x1dc   : > { %v1104_v4 = vadd.f32 %v1103_v15, %v1102_v60  ;;  %v1037_v51 = vpop.permute.xlu1 %1036 }
 0x1dd   : > { %v1078_v9 = vmul.f32 %v1037_v51, %v1760_v7  ;;  %v1109_v53 = vsel %vm875_vm7, %v1079_v6, 0.0 }
 0x1de   : > { %v1106_v8 = vadd.f32 %v1105_v39, %v1104_v4  ;;  %v1049_v10 = vpop.permute.xlu0 %1048 }
 0x1df   : > { %v1107_v13 = vsel %vm875_vm7, %v1078_v9, 0.0  ;;  %v1081_v17 = vmul.f32 %v1049_v10, %v1778_v24 }
 0x1e0   : > { %v1108_v16 = vadd.f32 %v1107_v13, %v1106_v8  ;;  %v1045_v59 = vpop.permute.xlu1 %1044 }
 0x1e1   : > { %v1080_v27 = vmul.f32 %v1045_v59, %v1772_v18  ;;  %v1113_v7 = vsel %vm875_vm7, %v1081_v17, 0.0 }
 0x1e2   : > { %v1110_v20 = vadd.f32 %v1109_v53, %v1108_v16  ;;  %v1057_v12 = vpop.permute.xlu0 %1056 }
 0x1e3   : > { %v1111_v21 = vsel %vm875_vm7, %v1080_v27, 0.0  ;;  %v1083_v26 = vmul.f32 %v1057_v12, %v1790_v40 }
 0x1e4   : > { %v1112_v23 = vadd.f32 %v1111_v21, %v1110_v20  ;;  %v1053_v11 = vpop.permute.xlu1 %1052 }
 0x1e5   : > { %v1082_v28 = vmul.f32 %v1053_v11, %v1784_v33  ;;  %v1117_v18 = vsel %vm875_vm7, %v1083_v26, 0.0 }
 0x1e6   : > { %v1114_v19 = vadd.f32 %v1113_v7, %v1112_v23  ;;  %v1065_v32 = vpop.permute.xlu0 %1064 }
 0x1e7   : > { %v1115_v34 = vsel %vm875_vm7, %v1082_v28, 0.0  ;;  %v1085_v38 = vmul.f32 %v1065_v32, %v1804_v57 }
 0x1e8   : > { %v1116_v35 = vadd.f32 %v1115_v34, %v1114_v19  ;;  %v1061_v24 = vpop.permute.xlu1 %1060 }
 0x1e9   : > { %v1084_v58 = vmul.f32 %v1061_v24, %v1797_v50  ;;  %v1121_v44 = vsel %vm911_vm8, %v1085_v38, 0.0 }
 0x1ea   : > { %v1118_v25 = vadd.f32 %v1117_v18, %v1116_v35  ;;  %v985_v36 = vpop.permute.xlu0 %984 }
 0x1eb   : > { %v1119_v40 = vsel %vm875_vm7, %v1084_v58, 0.0  ;;  %v987_v41 = vadd.f32 %v985_v36, %v923_v56 }
 0x1ec   : > { %v1120_v33 = vadd.f32 %v1119_v40, %v1118_v25 }
 0x1ed   : > { %989 = vst.msk [vmem:[#allocation3] sm:$0x1] %vm320_vm6, %v987_v41 }
 0x1ee   : > { %v1122_v45 = vadd.f32 %v1121_v44, %v1120_v33 }
 0x1f0   : > { %v1123_v0 = vrot.slane %v1122_v45, 4 }
 0x1f2   : > { %v1124_v46 = vadd.f32 %v1123_v0, %v1122_v45 }
 0x1f4   : > { %v1125_v47 = vrot.slane %v1124_v46, 2  ;;  %v1312_v31 = vld [vmem:[#allocation3] ss:$0 sm:$0xff] }
 0x1f5   : > { %1154 = vrot.lane.b32.xlu0 %v1312_v31, %s1415_s30 }
 0x1f6   : > { %v1126_v57 = vadd.f32 %v1125_v47, %v1124_v46 }
 0x1f8   : > { %v1127_v50 = vrot.slane %v1126_v57, 1 }
 0x1fa   : > { %v1128_v52 = vadd.f32 %v1127_v50, %v1126_v57 }
 0x1fc   : > { %v1129_v48 = vadd.f32 %v1128_v52, %v990_v42 }
 0x1fe   : > { %1130 = vst.msk [vmem:[#allocation4] sm:$0x1] %vm318_vm4, %v1129_v48 }
 0x205   : > { %v1313_v14 = vld [vmem:[#allocation4] ss:$0 sm:$0xff] }
 0x206   : > { %1165 = vrot.lane.b32.xlu0 %v1313_v14, %s1416_s8 }
 0x261   : > { %v1138_v5 = vpop.xlane.xlu1 %1137 }
 0x262   : > { %v1139_v55 = vrot.slane %v1138_v5, 4 }
 0x264   : > { %v1140_v37 = vadd.f32 %v1139_v55, %v1138_v5 }
 0x266   : > { %v1141_v61 = vrot.slane %v1140_v37, 2 }
 0x267   : > { %v1155_v22 = vpop.permute.xlu0 %1154 }
 0x268   : > { %v1142_v62 = vadd.f32 %v1141_v61, %v1140_v37 }
 0x26a   : > { %v1143_v63 = vrot.slane %v1142_v62, 1 }
 0x26c   : > { %v1144_v30 = vadd.f32 %v1143_v63, %v1142_v62 }
 0x26e   : > { %1339 = vpush %v1144_v30 }
 0x278   : > { %v1166_v29 = vpop.permute.xlu0 %1165 }
 0x29f   : > { %s1340_s9 = spop %1339 }
 0x2a0   : > { %v1146_v43 = vstv %s1340_s9 }
 0x2a1   : > { %1147 = vst.msk [vmem:[%s312_s7] sm:$0x1] %vm320_vm6, %v1146_v43 }
 0x2a2   : > { %1158 = vst.msk [vmem:[%s312_s7] sm:$0x1] %vm1157_vm9, %v1155_v22 }
 0x2a3   : > { %1169 = vst.msk [vmem:[%s312_s7] sm:$0x1] %vm1168_vm10, %v1166_v29 }
 0x2a4 PF: > { %s13_s14 = sadd.s32 1, %s1407_s14   ;;  %s1873_s12 = smov %s1403_s13 }
 0x2a5   : > { %p10_p5 = scmp.ge.s32.totalorder %s13_s14, 5   ;;  %s1874_s13 = smov %s1876_s15 }
 0x2a7   :  { %12 = sbr.rel (!%p10_p5) target bundleno = 2 (0x2), region = 76 }

</bundles_post_ra>
